<compile_context>
chip_gen: v7x
topology: tpu7x:2x2x1
jax: 0.10.0
libtpu: 0.0.40
codegen_flags: <defaults>
</compile_context>

<pallas_src>
import functools

import jax
import jax.numpy as jnp
from jax.experimental import pallas as pl
from jax.experimental.pallas import tpu as pltpu


# --------------------------- helpers ------------------------------------------

def _round_up(x, m):
    return ((x + m - 1) // m) * m


def _concat_tile(M, d_total, itemsize, *, cap=2048, budget=24 << 20):
    """Row tile for the pure-copy concat kernel."""
    per_row = 4 * d_total * itemsize            # double-buffered in rows + out row
    tm = max(8, min(cap, budget // per_row) // 8 * 8)
    if M <= tm:
        tm = M                                   # full-extent dim: any size OK
    # v7x has 2 TensorCores; make sure the parallel grid has >= 2 tiles.
    if pl.cdiv(M, tm) == 1 and M >= 16:
        tm = _round_up((M + 1) // 2, 8)
    return tm


def _fc_tiles(M, N, K, w_bytes, *, tm_cap=512, tn_single_cap=2048,
              budget=20 << 20):
    """Tile sizes for the fused concat+matmul kernel (no K tiling)."""
    # Single N tile whenever output_dim is modest: the activation blocks then
    # stream from HBM exactly once (x-read roofline for skinny outputs).
    if N <= tn_single_cap:
        tn = N
    else:
        tn = max(128, min(512, (N // 128) * 128))
        if tn >= N:
            tn = N
    per_row = 2 * (K * 4 + tn * 4)               # db'ed img+txt rows + out row
    w_fixed = 2 * (K * tn * w_bytes + tn * 4)    # db'ed weight + bias blocks
    avail = max(budget - w_fixed, 8 * per_row)
    tm = max(8, min(tm_cap, avail // per_row) // 8 * 8)
    if M <= tm:
        tm = M
    # v7x dual TensorCore: guarantee >= 2 parallel tiles when batch allows.
    if (pl.cdiv(M, tm) * pl.cdiv(N, tn)) == 1 and M >= 16:
        tm = _round_up((M + 1) // 2, 8)
    return tm, tn


# --------------------------- Pallas kernels -----------------------------------

def _concat_kernel(img_ref, txt_ref, out_ref):
    # Pure data movement: image features fill the left lane range, text
    # features the right lane range of the same row tile.
    di = img_ref.shape[1]
    out_ref[:, :di] = img_ref[...]
    out_ref[:, di:] = txt_ref[...]


def _fc_fused_kernel(img_ref, txt_ref, w_img_ref, w_txt_ref, b_ref, o_ref, *,
                     compute_dtype):
    # Fused concat + Linear: no concat buffer, no K tiling, no accumulator
    # scratch.  Accumulation is f32 regardless of the MXU input dtype.
    img = img_ref[...]
    txt = txt_ref[...]
    if compute_dtype is not None:
        img = img.astype(compute_dtype)          # weights pre-cast at init
        txt = txt.astype(compute_dtype)
    acc = jnp.dot(img, w_img_ref[...], preferred_element_type=jnp.float32)
    acc = acc + jnp.dot(txt, w_txt_ref[...], preferred_element_type=jnp.float32)
    o_ref[...] = (acc + b_ref[...]).astype(o_ref.dtype)


# --------------------------- wrappers -----------------------------------------

def mixer_concat(image_features, text_features, *, tm_cap=2048):
    B, Di = image_features.shape
    B2, Dt = text_features.shape
    assert B == B2, "batch mismatch"
    dtype = image_features.dtype
    itemsize = jnp.dtype(dtype).itemsize
    if (text_features.dtype != dtype or itemsize != 4
            or Di % 128 != 0 or Dt % 128 != 0):
        # Lane-misaligned or sub-32-bit concat is pure data movement; XLA's
        # concatenate already runs at the HBM roofline and avoids masked
        # in-VMEM lane shifts, so don't force it through a Pallas kernel.
        return jnp.concatenate([image_features, text_features], axis=1)

    d_total = Di + Dt
    tm = _concat_tile(B, d_total, itemsize, cap=tm_cap)
    vmem_limit = int(4 * tm * d_total * itemsize + (8 << 20))

    return pl.pallas_call(
        _concat_kernel,
        out_shape=jax.ShapeDtypeStruct((B, d_total), dtype),
        grid_spec=pltpu.PrefetchScalarGridSpec(
            num_scalar_prefetch=0,
            grid=(pl.cdiv(B, tm),),
            in_specs=[pl.BlockSpec((tm, Di), lambda i: (i, 0)),
                      pl.BlockSpec((tm, Dt), lambda i: (i, 0))],
            out_specs=pl.BlockSpec((tm, d_total), lambda i: (i, 0))),
        compiler_params=pltpu.CompilerParams(
            dimension_semantics=("parallel",),
            vmem_limit_bytes=vmem_limit),
    )(image_features, text_features)


def mixer_fc_fused(image_features, text_features, w_img_t, w_txt_t, b2d, *,
                   compute_dtype=None, tm_cap=512, tn_single_cap=2048):
    """out = cat([img, txt], 1) @ [w_img_t; w_txt_t] + b  (concat fused away).

    w_img_t : (Di, output_dim)   -- pre-transposed & pre-split weight (cached)
    w_txt_t : (Dt, output_dim)
    b2d     : (1, output_dim)    -- f32 bias, pre-reshaped (cached)
    """
    B, Di = image_features.shape
    B2, Dt = text_features.shape
    assert B == B2, "batch mismatch"
    Di2, N = w_img_t.shape
    Dt2, N2 = w_txt_t.shape
    assert Di == Di2 and Dt == Dt2 and N == N2, "weight / feature dim mismatch"
    out_dtype = image_features.dtype

    K = Di + Dt
    w_bytes = jnp.dtype(w_img_t.dtype).itemsize
    tm, tn = _fc_tiles(B, N, K, w_bytes, tm_cap=tm_cap,
                       tn_single_cap=tn_single_cap)

    # Double-buffered img/txt/weight/bias/out blocks + headroom; this stays far
    # below v7x's 64 MiB per-TC VMEM for any realistic Mixer shape.
    vmem_limit = int(2 * (tm * K * 4 + K * tn * w_bytes + tn * 4 + tm * tn * 4)
                     + (8 << 20))
    if vmem_limit > (48 << 20):
        # TODO(synk): shapes this large would need a K-tiled accumulator
        # variant; fall back to XLA rather than risk VMEM OOM / spills.
        x = jnp.concatenate([image_features, text_features], axis=1)
        if compute_dtype is not None:
            x = x.astype(compute_dtype)
        w = jnp.concatenate([w_img_t, w_txt_t], axis=0)
        out = jnp.dot(x, w, preferred_element_type=jnp.float32) + b2d
        return out.astype(out_dtype)

    kernel = functools.partial(_fc_fused_kernel, compute_dtype=compute_dtype)
    return pl.pallas_call(
        kernel,
        out_shape=jax.ShapeDtypeStruct((B, N), out_dtype),
        grid_spec=pltpu.PrefetchScalarGridSpec(
            num_scalar_prefetch=0,
            grid=(pl.cdiv(B, tm), pl.cdiv(N, tn)),
            in_specs=[
                pl.BlockSpec((tm, Di), lambda i, j: (i, 0)),
                pl.BlockSpec((tm, Dt), lambda i, j: (i, 0)),
                pl.BlockSpec((Di, tn), lambda i, j: (0, j)),
                pl.BlockSpec((Dt, tn), lambda i, j: (0, j)),
                pl.BlockSpec((1, tn), lambda i, j: (0, j)),
            ],
            out_specs=pl.BlockSpec((tm, tn), lambda i, j: (i, j))),
        compiler_params=pltpu.CompilerParams(
            dimension_semantics=("parallel", "parallel"),
            vmem_limit_bytes=vmem_limit),
    )(image_features, text_features, w_img_t, w_txt_t, b2d)


class Mixer:
    """JAX/Pallas port of the PyTorch Mixer module."""

    def __init__(self, output_dim, process='concat', key=None,
                 compute_dtype=None):
        self.process = process
        self.output_dim = output_dim
        # compute_dtype=jnp.bfloat16 feeds the MXU bf16 (f32 accumulation);
        # default None keeps fp32 parity with the PyTorch nn.Linear.
        self.compute_dtype = compute_dtype
        self._key = key if key is not None else jax.random.PRNGKey(0)
        self._fc_params = {}   # (Di, Dt) -> (w_img_t, w_txt_t, b2d)

    def _get_fc_params(self, Di, Dt):
        # TODO(synk): the PyTorch code creates a *fresh* nn.Linear every
        # forward; we cache deterministic weights per (Di, Dt) so the RNG,
        # transpose, split and dtype cast stay off the forward hot path.
        ck = (Di, Dt)
        if ck not in self._fc_params:
            in_dim = Di + Dt
            kw, kb = jax.random.split(self._key)
            bound = 1.0 / float(in_dim) ** 0.5
            w = jax.random.uniform(kw, (self.output_dim, in_dim),
                                   jnp.float32, -bound, bound)
            b = jax.random.uniform(kb, (self.output_dim,),
                                   jnp.float32, -bound, bound)
            w_t = jnp.transpose(w)                       # (in_dim, out_dim), once
            wdt = self.compute_dtype or jnp.float32
            w_img_t = w_t[:Di].astype(wdt)               # concat fused into the
            w_txt_t = w_t[Di:].astype(wdt)               # matmul via this split
            b2d = b.reshape(1, self.output_dim).astype(jnp.float32)
            self._fc_params[ck] = (w_img_t, w_txt_t, b2d)
        return self._fc_params[ck]

    def __call__(self, image_features, text_features):
        if self.process == 'concat':
            return mixer_concat(image_features, text_features)
        elif self.process == 'fc':
            w_img_t, w_txt_t, b2d = self._get_fc_params(
                image_features.shape[1], text_features.shape[1])
            return mixer_fc_fused(image_features, text_features,
                                  w_img_t, w_txt_t, b2d,
                                  compute_dtype=self.compute_dtype)
        else:
            # TODO(synk): 'cross_attention' and 'MoE' reference classes not
            # defined in the source file; no Pallas equivalent can be derived.
            raise NotImplementedError(self.process)


# --------------------------- main ----------------------------------------------

if __name__ == "__main__":
    key = jax.random.PRNGKey(0)
    k_img, k_txt, k_params = jax.random.split(key, 3)

    B, Di, Dt, OUT = 16, 256, 128, 192
    img = jax.random.normal(k_img, (B, Di), dtype=jnp.float32)
    txt = jax.random.normal(k_txt, (B, Dt), dtype=jnp.float32)
    ref_concat = jnp.concatenate([img, txt], axis=1)

    # --- 'concat' (default process): lane-aligned tiled Pallas copy ---
    mixer_c = Mixer(OUT, process='concat')
    out_c = jax.block_until_ready(mixer_c(img, txt))
    assert out_c.shape == (B, Di + Dt)
    assert bool(jnp.array_equal(out_c, ref_concat)), "concat mismatch"

    # ragged batch + forced multi-tile grid (exercises cdiv edge-block masking)
    out_c2 = jax.block_until_ready(mixer_concat(img[:10], txt[:10], tm_cap=8))
    assert bool(jnp.array_equal(out_c2, ref_concat[:10])), "concat (ragged) mismatch"

    # --- 'fc': concat fused into a single-K-block matmul ---
    mixer_f = Mixer(OUT, process='fc', key=k_params)
    out_f = jax.block_until_ready(mixer_f(img, txt))
    w_img_t, w_txt_t, b2d = mixer_f._fc_params[(Di, Dt)]
    w_full = jnp.concatenate([w_img_t, w_txt_t], axis=0).astype(jnp.float32)
    ref_fc = jnp.dot(ref_concat, w_full,
                     precision=jax.lax.Precision.HIGHEST) + b2d
    assert out_f.shape == (B, OUT)
    assert bool(jnp.allclose(out_f, ref_fc, atol=1e-3, rtol=1e-3)), "fc mismatch"

    # ragged batch + forced (M, N) multi-tile grid (masked edge on both axes)
    out_f2 = jax.block_until_ready(
        mixer_fc_fused(img[:10], txt[:10], w_img_t, w_txt_t, b2d,
                       tm_cap=8, tn_single_cap=128))
    assert bool(jnp.allclose(out_f2, ref_fc[:10], atol=1e-3, rtol=1e-3)), \
        "fc (multi-tile) mismatch"

    # bf16 MXU inputs with f32 accumulation (v6e/v7x perf option)
    mixer_fb = Mixer(OUT, process='fc', key=k_params,
                     compute_dtype=jnp.bfloat16)
    out_fb = jax.block_until_ready(mixer_fb(img, txt))
    assert bool(jnp.allclose(out_fb, ref_fc, atol=5e-2, rtol=5e-2)), \
        "fc bf16 mismatch"

    print("KERNEL_OK")
</pallas_src>

<mosaic_0001>
module attributes {stable_mosaic.version = 11 : i64} {
  func.func @_concat_kernel(%arg0: i32, %arg1: memref<8x256xf32, #tpu.memory_space<vmem>>, %arg2: memref<8x128xf32, #tpu.memory_space<vmem>>, %arg3: memref<8x384xf32, #tpu.memory_space<vmem>>) attributes {dimension_semantics = [#tpu.dimension_semantics<parallel>], iteration_bounds = array<i64: 2>, scalar_prefetch = 0 : i64, scratch_operands = 0 : i64, tpu.core_type = #tpu.core_type<tc>, window_params = [{transform_indices = @transform_0, window_bounds = array<i64: 8, 256>}, {transform_indices = @transform_1, window_bounds = array<i64: 8, 128>}, {transform_indices = @transform_2, window_bounds = array<i64: 8, 384>}]} {
    %c0 = arith.constant 0 : index
    %c0_0 = arith.constant 0 : index
    %0 = vector.load %arg1[%c0, %c0_0] : memref<8x256xf32, #tpu.memory_space<vmem>>, vector<8x256xf32>
    %c0_1 = arith.constant 0 : index
    %c0_2 = arith.constant 0 : index
    %1 = vector.load %arg3[%c0_1, %c0_2] : memref<8x384xf32, #tpu.memory_space<vmem>>, vector<8x256xf32>
    tpu.vector_store %arg3[%c0_1, %c0_2], %0 {strides = array<i32>} : memref<8x384xf32, #tpu.memory_space<vmem>>, vector<8x256xf32>,
    %c0_3 = arith.constant 0 : index
    %c0_4 = arith.constant 0 : index
    %2 = vector.load %arg2[%c0_3, %c0_4] : memref<8x128xf32, #tpu.memory_space<vmem>>, vector<8x128xf32>
    %c0_5 = arith.constant 0 : index
    %c256 = arith.constant 256 : index
    %3 = vector.load %arg3[%c0_5, %c256] : memref<8x384xf32, #tpu.memory_space<vmem>>, vector<8x128xf32>
    tpu.vector_store %arg3[%c0_5, %c256], %2 {strides = array<i32>} : memref<8x384xf32, #tpu.memory_space<vmem>>, vector<8x128xf32>,
    return
  }
  func.func @transform_0(%arg0: i32) -> (i32, i32) {
    %c0_i32 = arith.constant 0 : i32
    %c0_i32_0 = arith.constant 0 : i32
    return %arg0, %c0_i32 : i32, i32
  }
  func.func @transform_1(%arg0: i32) -> (i32, i32) {
    %c0_i32 = arith.constant 0 : i32
    %c0_i32_0 = arith.constant 0 : i32
    return %arg0, %c0_i32 : i32, i32
  }
  func.func @transform_2(%arg0: i32) -> (i32, i32) {
    %c0_i32 = arith.constant 0 : i32
    %c0_i32_0 = arith.constant 0 : i32
    return %arg0, %c0_i32 : i32, i32
  }
}

</mosaic_0001>

<bundles_post_ra>
// kernel: tpu_custom_call.1
= control target key start
LH: loop header
LB: loop body
LE: loop exit
PB: predicated region body
PF: predicated region fallthrough
CT: control target
= control target key end

     0   :  { %7 = vsyncpa [#allocation3], 0  ;;  %s734_s0 = inlined_call_operand.hbm [shape: f32[16,256], index: 0, kind: input, shape index: {}]   ;;  %s735_s1 = inlined_call_operand.hbm [shape: f32[16,128], index: 1, kind: input, shape index: {}]   ;;  %s736_s2 = inlined_call_operand.hbm [shape: f32[16,384], index: 2, kind: output, shape index: {}]  }
   0x1   :  { %9 = vsyncpa [#allocation3 + $0x1], 0 }
   0x2   :  { %10 = vsyncpa [#allocation6], 0 }
   0x3   :  { %12 = vsyncpa [#allocation6 + $0x1], 0 }
   0x4   :  { %13 = vsyncpa [#allocation4], 0 }
   0x5   :  { %15 = vsyncpa [#allocation4 + $0x1], 0  ;;  %s529_s9 = smov 0   ;;  %s531_s10 = smov 0  }
   0x6   :  { %s533_s11 = smov 0   ;;  %s535_s12 = smov 0  }
   0x7 LB: > { %s550_s13 = sadd.s32 4294967295, %s509_s12   ;;  %s311_s14 = sadd.s32 4294967294, %s509_s12   ;;  %s509_s12 = sphi %s535_s12, %s755_s12   ;;  %s505_s11 = sphi %s533_s11, %s754_s11   ;;  %s501_s10 = sphi %s531_s10, %s753_s10   ;;  %s497_s9 = sphi %s529_s9, %s752_s9  }
   0x8   : > { %s554_s15 = sadd.s32 1, %s509_s12   ;;  %s28_s16 = sadd.s32 1, %s505_s11 }
   0x9   : > { %s25_s17 = ssub.s32 %s509_s12, %s554_s15  ;;  %p35_p0 = scmp.ne.s32.totalorder %s505_s11, %s501_s10 }
   0xa   : > { %p26_p1 = scmp.eq.s32.totalorder %s25_s17, 0  ;;  %p36_p2 = scmp.eq.s32.totalorder %s509_s12, 0 }
   0xb   : > { %p41_p3 = scmp.ne.s32.totalorder %s501_s10, %s497_s9  ;;  %p42_p4 = scmp.eq.s32.totalorder %s550_s13, 0 }
   0xc   : > { %s566_s18 = scalar_select %p26_p1, %s505_s11, %s28_s16  }
   0xd   : > { %p568_p5 = por %p36_p2, %p35_p0  ;;  %p572_p6 = por %p42_p4, %p41_p3 }
   0xe   : > { %p91_p7 = scmp.eq.s32.totalorder %s550_s13, 1  ;;  %p97_p8 = scmp.eq.s32.totalorder %s311_s14, 1 }
   0xf   : > { %s740_s20 = scalar_select %p572_p6, 1, 0 }
  0x10   : > { %p345_p10 = scmp.lt.s32.totalorder %s509_s12, 2  ;;  %p579_p11 = por %p91_p7, %p35_p0 }
  0x11   : > { %p583_p12 = por %p97_p8, %p41_p3  ;;  %s588_s23 = sand.u32 1, %s505_s11  }
  0x12   : > { %s741_s21 = scalar_select %p579_p11, 1, 0 }
  0x13   : > { %s742_s22 = scalar_select %p583_p12, 1, 0 }
  0x14   : > { %s325_s24 = sshll.u32 %s509_s12, 8  ;;  %s314_s25 = sshll.u32 %s588_s23, 4 }
  0x15   : > { %s595_s28 = scalar_lea.hbm %s734_s0, %s325_s24  ;;  %s121_s29 = scalar_lea.vmem [#allocation2], %s314_s25 }
  0x16   : > { %s129_s30 = sshll.u32 %s121_s29, 4  ;;  %p599_p13 = pnand %p345_p10, %p568_p5  ;;  %s603_s30 = int_to_ptr.vmem [resolvable:$true] %s129_s30 }
  0x17   : > { %s118_s4 = scalar_lea.sflag [#allocation3], %s588_s23  ;;  %s379_s5 = scalar_lea.hbm %s595_s28, 256 }
  0x18   : > { %p380_p2 = scmp.ne.s32.totalorder %s595_s28, %s379_s5  ;;  %p381_p3 = pneg %p599_p13 }
  0x19   : > { %s384_s8 = scalar_lea.hbm %s734_s0, 512  ;;  %p385_p5 = scmp.lt.u32.totalorder %s595_s28, %s734_s0 }
  0x1a   : > { %p382_p4 = pnand %p381_p3, %p380_p2  ;;  %p386_p8 = scmp.lt.u32.totalorder %s384_s8, %s379_s5 }
  0x1b   : > { %p388_p9 = scmp.lt.u32.totalorder %s379_s5, %s595_s28 }
  0x1c   : > { %p383_p7 = pneg %p382_p4  ;;  %p387_p10 = por %p386_p8, %p385_p5 }
  0x1e   : > { %p389_p0 = por %p388_p9, %p387_p10 }
  0x20   : > { %p390_p1 = pnand %p389_p0, %p383_p7 }
  0x22   : > { %393 = shalt.err (!%p390_p1)
}
  0x23   : > { %s394_s17 = scalar_lea.vmem %s603_s30, 256  ;;  %s511_s19 = smov [#allocation2]  }
  0x24   : > { %p395_p2 = scmp.ne.s32.totalorder %s603_s30, %s394_s17  ;;  %s399_s24 = sshll.u32 %s511_s19, 4  ;;  %s400_s24 = int_to_ptr.vmem [resolvable:$false] %s399_s24 }
  0x25   : > { %s401_s25 = scalar_lea.vmem %s400_s24, 512  ;;  %p402_p11 = scmp.lt.s32.totalorder %s603_s30, %s400_s24 }
  0x26   : > { %p397_p4 = pnand %p395_p2, %p381_p3  ;;  %p403_p5 = scmp.lt.s32.totalorder %s401_s25, %s394_s17 }
  0x28   : > { %p398_p12 = pneg %p397_p4  ;;  %p404_p8 = por %p403_p5, %p402_p11 }
  0x2a   : > { %p405_p9 = pnand %p404_p8, %p398_p12 }
  0x2c   : > { %408 = shalt.err (!%p405_p9)
}
  0x2d   : > { %337 = dma.hbm_to_vmem [thread:$0]  (!%p599_p13), %s595_s28, 256, %s603_s30, %s118_s4  }
  0x2e   : > { %p744_p0 = scmp.lt.s32.totalorder %s509_s12, 3  ;;  %p745_p1 = scmp.ge.s32.totalorder %s509_s12, 1 }
  0x2f   : > { %s317_s27 = sshll.u32 %s588_s23, 3  ;;  %s318_s29 = sshll.u32 %s509_s12, 7 }
  0x30   : > { %p637_p7 = pnand %p745_p1, %p744_p0  ;;  %s646_s7 = scalar_lea.hbm %s735_s1, %s318_s29 }
  0x31   : > { %s140_s8 = scalar_lea.vmem [#allocation5], %s317_s27  ;;  %s137_s28 = scalar_lea.sflag [#allocation6], %s588_s23 }
  0x32   : > { %s746_s26 = scalar_select %p637_p7, 1, 0 }
  0x33   : > { %s147_s14 = sshll.u32 %s140_s8, 4  ;;  %s409_s30 = scalar_lea.hbm %s646_s7, 128  ;;  %s148_s14 = int_to_ptr.vmem [resolvable:$true] %s147_s14 }
  0x34   : > { %p410_p11 = scmp.ne.s32.totalorder %s646_s7, %s409_s30  ;;  %s414_s17 = scalar_lea.hbm %s735_s1, 256 }
  0x35   : > { %p415_p2 = scmp.lt.u32.totalorder %s646_s7, %s735_s1  ;;  %p416_p4 = scmp.lt.u32.totalorder %s414_s17, %s409_s30 }
  0x36   : > { %p412_p12 = pnand %p410_p11, %p381_p3  ;;  %p418_p8 = scmp.lt.u32.totalorder %s409_s30, %s646_s7 }
  0x37   : > { %p417_p5 = por %p416_p4, %p415_p2 }
  0x38   : > { %p413_p10 = pneg %p412_p12 }
  0x39   : > { %p419_p9 = por %p418_p8, %p417_p5 }
  0x3b   : > { %p420_p0 = pnand %p419_p9, %p413_p10 }
  0x3d   : > { %423 = shalt.err (!%p420_p0)
}
  0x3e   : > { %s424_s23 = scalar_lea.vmem %s148_s14, 128  ;;  %s512_s25 = smov [#allocation5]  }
  0x3f   : > { %p425_p1 = scmp.ne.s32.totalorder %s148_s14, %s424_s23  ;;  %s429_s27 = sshll.u32 %s512_s25, 4  ;;  %s430_s27 = int_to_ptr.vmem [resolvable:$false] %s429_s27 }
  0x40   : > { %s431_s29 = scalar_lea.vmem %s430_s27, 256  ;;  %p432_p6 = scmp.lt.s32.totalorder %s148_s14, %s430_s27 }
  0x41   : > { %p427_p11 = pnand %p425_p1, %p381_p3  ;;  %p433_p7 = scmp.lt.s32.totalorder %s431_s29, %s424_s23 }
  0x43   : > { %p428_p12 = pneg %p427_p11  ;;  %p434_p2 = por %p433_p7, %p432_p6 }
  0x45   : > { %p435_p4 = pnand %p434_p2, %p428_p12 }
  0x47   : > { %438 = shalt.err (!%p435_p4)
}
  0x48   : > { %340 = dma.hbm_to_vmem [thread:$0]  (!%p599_p13), %s646_s7, 128, %s148_s14, %s137_s28  }
  0x49   : > { %p747_p10 = scmp.ne.s32.totalorder %s746_s26, 0 }
  0x4a   : > { %s671_s5 = sand.u32 (!%p747_p10), 1, %s501_s10   ;;  %p748_p3 = scmp.ne.s32.totalorder (!%p747_p10), %s740_s20, 0 }
  0x4b   : > { %156 = sbr.rel (%p747_p10) target bundleno = 112 (0x70), region = 28  ;;  %s320_s6 = sshll.u32 (!%p747_p10), %s671_s5, 4 }
  0x4c   : > { %s159_s8 = scalar_lea.sflag (!%p747_p10), [#allocation3], %s671_s5  ;;  %s162_s30 = scalar_lea.vmem (!%p747_p10), [#allocation2], %s320_s6 }
  0x52   : > { %484 = dma.done.wait (%p748_p3), %s159_s8, 256  }
  0x53   : > { %486 = vsyncadd (%p748_p3), %s159_s8, 4294967040  ;;  %s321_s3 = sshll.u32 %s671_s5, 3  ;;  %s168_s26 = scalar_lea.sflag [#allocation6], %s671_s5 }
  0x54   : > { %s171_s7 = scalar_lea.vmem [#allocation5], %s321_s3 }
  0x55   : > { %488 = dma.done.wait (%p748_p3), %s168_s26, 128  }
  0x56   : > { %490 = vsyncadd (%p748_p3), %s168_s26, 4294967168  ;;  %s326_s14 = smul.u32 24, %s671_s5  ;;  %v197_v0 = vld [vmem:[%s162_s30] sm:$0xff]  ;;  %v198_v1 = vld [vmem:[%s162_s30 + $0x8] sm:$0xff]  ;;  %s204_s20 = scalar_lea.sflag [#allocation4], %s671_s5 }
  0x57   : > { %s327_s28 = smul.u32 384, %s550_s13  ;;  %v201_v2 = vld [vmem:[%s171_s7] sm:$0xff]  ;;  %p749_p13 = scmp.ne.s32.totalorder %s741_s21, 0 }
  0x58   : > { %s196_s4 = scalar_lea.vmem [#allocation7], %s326_s14  ;;  %s513_s23 = smov [#allocation7]  }
  0x59   : > { %s218_s16 = sshll.u32 %s196_s4, 4  ;;  %s692_s24 = scalar_lea.hbm %s736_s2, %s327_s28  ;;  %199 = vst [vmem:[%s196_s4] sm:$0xff] %v197_v0  ;;  %200 = vst [vmem:[%s196_s4 + $0x8] sm:$0xff] %v198_v1  ;;  %s687_s16 = int_to_ptr.vmem [resolvable:$true] %s218_s16 }
  0x5a   : > { %202 = vst [vmem:[%s196_s4 + $0x10] sm:$0xff] %v201_v2  ;;  %s439_s13 = scalar_lea.vmem %s687_s16, 384  ;;  %s443_s25 = sshll.u32 %s513_s23, 4  ;;  %s444_s25 = int_to_ptr.vmem [resolvable:$false] %s443_s25 }
  0x5b   : > { %p440_p6 = scmp.ne.s32.totalorder %s687_s16, %s439_s13  ;;  %s445_s27 = scalar_lea.vmem %s444_s25, 768 }
  0x5c   : > { %p446_p8 = scmp.lt.s32.totalorder %s687_s16, %s444_s25  ;;  %p447_p9 = scmp.lt.s32.totalorder %s445_s27, %s439_s13 }
  0x5d   : > { %p441_p7 = pnand %p440_p6, %p749_p13 }
  0x5e   : > { %p448_p0 = por %p447_p9, %p446_p8 }
  0x5f   : > { %p442_p5 = pneg %p441_p7 }
  0x61   : > { %p449_p1 = pnand %p448_p0, %p442_p5 }
  0x63   : > { %452 = shalt.err (!%p449_p1)
}
  0x64   : > { %s453_s29 = scalar_lea.hbm %s692_s24, 384  ;;  %s457_s8 = scalar_lea.hbm %s736_s2, 768 }
  0x65   : > { %p454_p11 = scmp.ne.s32.totalorder %s692_s24, %s453_s29  ;;  %p458_p4 = scmp.lt.u32.totalorder %s692_s24, %s736_s2 }
  0x66   : > { %p459_p10 = scmp.lt.u32.totalorder %s457_s8, %s453_s29  ;;  %p461_p6 = scmp.lt.u32.totalorder %s453_s29, %s692_s24 }
  0x67   : > { %p455_p12 = pnand %p454_p11, %p749_p13 }
  0x68   : > { %p460_p3 = por %p459_p10, %p458_p4 }
  0x69   : > { %p456_p2 = pneg %p455_p12 }
  0x6a   : > { %p462_p7 = por %p461_p6, %p460_p3 }
  0x6c   : > { %p463_p5 = pnand %p462_p7, %p456_p2 }
  0x6e   : > { %466 = shalt.err (!%p463_p5)
}
  0x6f   : > { %332 = dma.vmem_to_hbm [thread:$0]  (%p749_p13), %s687_s16, 384, %s692_s24, %s204_s20  }
  0x70 PF: > { %s230_s26 = sand.u32 1, %s497_s9   ;;  %p750_p8 = scmp.ne.s32.totalorder %s742_s22, 0 }
  0x71   : > { %p751_p9 = scmp.ge.s32.totalorder %s509_s12, 2  ;;  %s231_s7 = scalar_lea.sflag [#allocation4], %s230_s26 }
  0x73   : > { %p342_p0 = pnand %p751_p9, %p750_p8 }
  0x75   : > { %492 = dma.done.wait (!%p342_p0), %s231_s7, 384  }
  0x76   : > { %494 = vsyncadd (!%p342_p0), %s231_s7, 4294966912  ;;  %p18_p1 = scmp.ge.s32.totalorder %s554_s15, 4   ;;  %s752_s9 = smov %s501_s10 }
  0x77   : > { %s753_s10 = smov %s505_s11  ;;  %s754_s11 = smov %s566_s18 }
  0x78   : > { %s755_s12 = smov %s554_s15  ;;  %20 = sbr.rel (!%p18_p1) target bundleno = 7 (0x7), region = 86 }
  0x7f   :  { %236 = vsyncpa [#allocation3], 1 }
  0x80   :  { %238 = vsyncpa [#allocation3 + $0x1], 1 }
  0x81   :  { %239 = vsyncpa [#allocation6], 1 }
  0x82   :  { %241 = vsyncpa [#allocation6 + $0x1], 1 }
  0x83   :  { %242 = vsyncpa [#allocation4], 1 }
  0x84   :  { %244 = vsyncpa [#allocation4 + $0x1], 1 }

</bundles_post_ra>
